<compile_context>
chip_gen: v7x
topology: tpu7x:2x2x1
jax: 0.10.0
libtpu: 0.0.40
codegen_flags: <defaults>
</compile_context>

<pallas_src>
import math
import functools

import jax
import jax.numpy as jnp
from jax.experimental import pallas as pl
from jax.experimental.pallas import tpu as pltpu

# Row indices inside the packed (10, W) bias/scale slab.
_BQ, _BK, _BV, _BO, _G1, _BE1, _B1, _B2, _G2, _BE2 = range(10)


def _encoder_kernel(
    # inputs
    x_ref,
    wq_ref, wk_ref, wv_ref, wo_ref, w1_ref, w2_ref,
    vec_ref,
    # outputs
    y_ref, score_ref,
    *, b_tile, T, d_model, d_hidden, q, v, h,
):
    eps = 1e-5
    M = b_tile * T

    x = x_ref[...].reshape(M, d_model)                               # (M, d_model)

    bq  = vec_ref[_BQ:_BQ + 1,   0:q * h]
    bk  = vec_ref[_BK:_BK + 1,   0:q * h]
    bv  = vec_ref[_BV:_BV + 1,   0:v * h]
    bo  = vec_ref[_BO:_BO + 1,   0:d_model]
    g1  = vec_ref[_G1:_G1 + 1,   0:d_model]
    be1 = vec_ref[_BE1:_BE1 + 1, 0:d_model]
    b1  = vec_ref[_B1:_B1 + 1,   0:d_hidden]
    b2  = vec_ref[_B2:_B2 + 1,   0:d_model]
    g2  = vec_ref[_G2:_G2 + 1,   0:d_model]
    be2 = vec_ref[_BE2:_BE2 + 1, 0:d_model]

    # --- QKV projections, batch-flattened (M rows) ------------------------
    Q = jnp.dot(x, wq_ref[...], preferred_element_type=jnp.float32) + bq   # (M, q*h)
    K = jnp.dot(x, wk_ref[...], preferred_element_type=jnp.float32) + bk   # (M, q*h)
    V = jnp.dot(x, wv_ref[...], preferred_element_type=jnp.float32) + bv   # (M, v*h)

    # chunk(h, dim=-1) then cat(dim=0): head-major (h*b_tile, T, d_head)
    def split_heads(z, d_head):
        z = jnp.transpose(z.reshape(M, h, d_head), (1, 0, 2))              # (h, M, d_head)
        return z.reshape(h * b_tile, T, d_head)

    Qh = split_heads(Q, q)
    Kh = split_heads(K, q)
    Vh = split_heads(V, v)

    # --- attention (single batched einsum over h*b_tile) ------------------
    scale = 1.0 / math.sqrt(q)
    score = jnp.einsum('xtq,xsq->xts', Qh, Kh,
                       preferred_element_type=jnp.float32) * scale         # (h*b, T, T)
    score_ref[...] = score.reshape(h, b_tile, T, T)                        # head-major out

    s_max = jnp.max(score, axis=-1, keepdims=True)
    p = jnp.exp(score - s_max)
    # exact reciprocal (approx=True would exceed the 1e-4 reference tolerance)
    p = p * pl.reciprocal(jnp.sum(p, axis=-1, keepdims=True), approx=False)

    att = jnp.einsum('xts,xsv->xtv', p, Vh,
                     preferred_element_type=jnp.float32)                   # (h*b, T, v)
    # cat heads back along the feature dim -> (M, h*v)
    att_heads = jnp.transpose(att.reshape(h, b_tile, T, v),
                              (1, 2, 0, 3)).reshape(M, h * v)
    attn_out = jnp.dot(att_heads, wo_ref[...],
                       preferred_element_type=jnp.float32) + bo            # (M, d_model)

    # --- residual + LayerNorm 1 --------------------------------------------
    x1 = attn_out + x
    mu1 = jnp.mean(x1, axis=-1, keepdims=True)
    xc1 = x1 - mu1
    var1 = jnp.mean(xc1 * xc1, axis=-1, keepdims=True)
    ln1 = xc1 * jax.lax.rsqrt(var1 + eps) * g1 + be1

    # --- FeedForward ---------------------------------------------------------
    hid = jnp.dot(ln1, w1_ref[...], preferred_element_type=jnp.float32) + b1
    hid = jnp.maximum(hid, 0.0)
    ffn = jnp.dot(hid, w2_ref[...], preferred_element_type=jnp.float32) + b2

    # --- residual + LayerNorm 2 ----------------------------------------------
    x2 = ffn + ln1
    mu2 = jnp.mean(x2, axis=-1, keepdims=True)
    xc2 = x2 - mu2
    var2 = jnp.mean(xc2 * xc2, axis=-1, keepdims=True)
    ln2 = xc2 * jax.lax.rsqrt(var2 + eps) * g2 + be2

    y_ref[...] = ln2.reshape(b_tile, T, d_model).astype(y_ref.dtype)


def _pick_b_tile(B, T):
    """Largest divisor of B giving ~<=256 rows per step while keeping >=2 grid
    steps (so 'parallel' semantics can still shard across v7x's 2 TCs)."""
    target = max(1, 256 // max(T, 1))
    best = 1
    for d in range(1, B + 1):
        if B % d == 0 and d <= target and B // d >= 2:
            best = d
    return best


def _pack_vectors(params, *, q, v, h, d_model, d_hidden):
    """Pack the 10 tiny (1, n) vectors into one (10, W) slab (single DMA)."""
    width = max(q * h, v * h, d_model, d_hidden)
    rows = []
    for key in ('bq', 'bk', 'bv', 'bo', 'g1', 'be1', 'b1', 'b2', 'g2', 'be2'):
        a = params[key]
        rows.append(jnp.pad(a, ((0, 0), (0, width - a.shape[1]))))
    return jnp.concatenate(rows, axis=0)


def encoder_forward(x, params, *, q, v, h, b_tile=None):
    """x: (B, T, d_model) f32.  Returns (y (B,T,d_model), score (h*B,T,T))."""
    B, T, d_model = x.shape
    d_hidden = params['w1'].shape[1]
    if b_tile is None:
        b_tile = _pick_b_tile(B, T)
    assert B % b_tile == 0
    grid = (B // b_tile,)

    vec = _pack_vectors(params, q=q, v=v, h=h, d_model=d_model, d_hidden=d_hidden)

    kernel = functools.partial(
        _encoder_kernel, b_tile=b_tile, T=T, d_model=d_model,
        d_hidden=d_hidden, q=q, v=v, h=h)

    full = lambda shape: pl.BlockSpec(shape, lambda i: (0,) * len(shape))

    in_specs = [
        pl.BlockSpec((b_tile, T, d_model), lambda i: (i, 0, 0)),  # x
        full((d_model, q * h)),                                   # Wq
        full((d_model, q * h)),                                   # Wk
        full((d_model, v * h)),                                   # Wv
        full((v * h, d_model)),                                   # Wo
        full((d_model, d_hidden)),                                # W1
        full((d_hidden, d_model)),                                # W2
        full(vec.shape),                                          # packed biases/LN params
    ]
    out_specs = [
        pl.BlockSpec((b_tile, T, d_model), lambda i: (i, 0, 0)),  # y
        pl.BlockSpec((h, b_tile, T, T), lambda i: (0, i, 0, 0)),  # score, head-major
    ]
    out_shape = [
        jax.ShapeDtypeStruct((B, T, d_model), jnp.float32),
        jax.ShapeDtypeStruct((h, B, T, T), jnp.float32),
    ]

    y, score_hb = pl.pallas_call(
        kernel,
        grid_spec=pltpu.PrefetchScalarGridSpec(
            num_scalar_prefetch=0,
            grid=grid,
            in_specs=in_specs,
            out_specs=out_specs,
        ),
        out_shape=out_shape,
        compiler_params=pltpu.CompilerParams(
            dimension_semantics=("parallel",)),
    )(
        x,
        params['wq'], params['wk'], params['wv'], params['wo'],
        params['w1'], params['w2'],
        vec,
    )

    # PyTorch stacking: torch.cat(chunks, dim=0) -> index = head*B + b.
    # (h, B, T, T) -> (h*B, T, T) is a contiguous, data-movement-free reshape.
    score = score_hb.reshape(h * B, T, T)
    return y, score


def _reference(x, params, *, q, v, h):
    """Plain-JAX reference mirroring the PyTorch forward (eval mode)."""
    B, T, d_model = x.shape
    eps = 1e-5

    Q = x @ params['wq'] + params['bq'][0]
    K = x @ params['wk'] + params['bk'][0]
    V = x @ params['wv'] + params['bv'][0]
    Qc = jnp.concatenate(jnp.split(Q, h, axis=-1), axis=0)  # (h*B, T, q)
    Kc = jnp.concatenate(jnp.split(K, h, axis=-1), axis=0)
    Vc = jnp.concatenate(jnp.split(V, h, axis=-1), axis=0)
    score = jnp.einsum('btq,bsq->bts', Qc, Kc) / math.sqrt(q)
    p = jax.nn.softmax(score, axis=-1)
    att = jnp.einsum('bts,bsv->btv', p, Vc)
    att_heads = jnp.concatenate(jnp.split(att, h, axis=0), axis=-1)  # (B, T, h*v)
    attn_out = att_heads @ params['wo'] + params['bo'][0]

    def ln(z, g, b):
        mu = jnp.mean(z, axis=-1, keepdims=True)
        var = jnp.mean((z - mu) ** 2, axis=-1, keepdims=True)
        return (z - mu) / jnp.sqrt(var + eps) * g[0] + b[0]

    x1 = ln(attn_out + x, params['g1'], params['be1'])
    ffn = jnp.maximum(x1 @ params['w1'] + params['b1'][0], 0.0) @ params['w2'] + params['b2'][0]
    x2 = ln(ffn + x1, params['g2'], params['be2'])
    return x2, score


def make_params(key, d_model, d_hidden, q, v, h):
    ks = jax.random.split(key, 12)
    scale = 0.1
    return {
        'wq': scale * jax.random.normal(ks[0], (d_model, q * h), jnp.float32),
        'bq': scale * jax.random.normal(ks[1], (1, q * h), jnp.float32),
        'wk': scale * jax.random.normal(ks[2], (d_model, q * h), jnp.float32),
        'bk': scale * jax.random.normal(ks[3], (1, q * h), jnp.float32),
        'wv': scale * jax.random.normal(ks[4], (d_model, v * h), jnp.float32),
        'bv': scale * jax.random.normal(ks[5], (1, v * h), jnp.float32),
        'wo': scale * jax.random.normal(ks[6], (v * h, d_model), jnp.float32),
        'bo': scale * jax.random.normal(ks[7], (1, d_model), jnp.float32),
        'w1': scale * jax.random.normal(ks[8], (d_model, d_hidden), jnp.float32),
        'b1': scale * jax.random.normal(ks[9], (1, d_hidden), jnp.float32),
        'w2': scale * jax.random.normal(ks[10], (d_hidden, d_model), jnp.float32),
        'b2': scale * jax.random.normal(ks[11], (1, d_model), jnp.float32),
        'g1': jnp.ones((1, d_model), jnp.float32),
        'be1': jnp.zeros((1, d_model), jnp.float32),
        'g2': jnp.ones((1, d_model), jnp.float32),
        'be2': jnp.zeros((1, d_model), jnp.float32),
    }


if __name__ == "__main__":
    B, T = 2, 8
    d_model, d_hidden = 32, 64
    q = v = 8
    h = 4

    key = jax.random.PRNGKey(0)
    kx, kp = jax.random.split(key)
    x = jax.random.normal(kx, (B, T, d_model), jnp.float32)
    params = make_params(kp, d_model, d_hidden, q, v, h)

    y, score = encoder_forward(x, params, q=q, v=v, h=h)
    y = jax.block_until_ready(y)
    score = jax.block_until_ready(score)

    y_ref, score_ref = _reference(x, params, q=q, v=v, h=h)
    assert y.shape == (B, T, d_model)
    assert score.shape == (h * B, T, T)
    assert jnp.allclose(y, y_ref, atol=1e-4, rtol=1e-4)
    assert jnp.allclose(score, score_ref, atol=1e-4, rtol=1e-4)

    print("KERNEL_OK")
</pallas_src>

<mosaic_0001>
module attributes {stable_mosaic.version = 11 : i64} {
  func.func @_encoder_kernel(%arg0: i32, %arg1: memref<1x8x32xf32, #tpu.memory_space<vmem>>, %arg2: memref<32x32xf32, #tpu.memory_space<vmem>>, %arg3: memref<32x32xf32, #tpu.memory_space<vmem>>, %arg4: memref<32x32xf32, #tpu.memory_space<vmem>>, %arg5: memref<32x32xf32, #tpu.memory_space<vmem>>, %arg6: memref<32x64xf32, #tpu.memory_space<vmem>>, %arg7: memref<64x32xf32, #tpu.memory_space<vmem>>, %arg8: memref<10x64xf32, #tpu.memory_space<vmem>>, %arg9: memref<1x8x32xf32, #tpu.memory_space<vmem>>, %arg10: memref<4x1x8x8xf32, #tpu.memory_space<vmem>>) attributes {dimension_semantics = [#tpu.dimension_semantics<parallel>], iteration_bounds = array<i64: 2>, scalar_prefetch = 0 : i64, scratch_operands = 0 : i64, tpu.core_type = #tpu.core_type<tc>, window_params = [{transform_indices = @transform_0, window_bounds = array<i64: 1, 8, 32>}, {pipeline_mode = #tpu.pipeline_mode<synchronous>, transform_indices = @transform_1, window_bounds = array<i64: 32, 32>}, {pipeline_mode = #tpu.pipeline_mode<synchronous>, transform_indices = @transform_2, window_bounds = array<i64: 32, 32>}, {pipeline_mode = #tpu.pipeline_mode<synchronous>, transform_indices = @transform_3, window_bounds = array<i64: 32, 32>}, {pipeline_mode = #tpu.pipeline_mode<synchronous>, transform_indices = @transform_4, window_bounds = array<i64: 32, 32>}, {pipeline_mode = #tpu.pipeline_mode<synchronous>, transform_indices = @transform_5, window_bounds = array<i64: 32, 64>}, {pipeline_mode = #tpu.pipeline_mode<synchronous>, transform_indices = @transform_6, window_bounds = array<i64: 64, 32>}, {pipeline_mode = #tpu.pipeline_mode<synchronous>, transform_indices = @transform_7, window_bounds = array<i64: 10, 64>}, {transform_indices = @transform_8, window_bounds = array<i64: 1, 8, 32>}, {transform_indices = @transform_9, window_bounds = array<i64: 4, 1, 8, 8>}]} {
    %c0 = arith.constant 0 : index
    %c0_0 = arith.constant 0 : index
    %c0_1 = arith.constant 0 : index
    %0 = vector.load %arg1[%c0, %c0_0, %c0_1] : memref<1x8x32xf32, #tpu.memory_space<vmem>>, vector<1x8x32xf32>
    %1 = vector.shape_cast %0 : vector<1x8x32xf32> to vector<8x32xf32>
    %c0_2 = arith.constant 0 : index
    %c0_3 = arith.constant 0 : index
    %2 = vector.load %arg8[%c0_2, %c0_3] : memref<10x64xf32, #tpu.memory_space<vmem>>, vector<1x32xf32>
    %c1 = arith.constant 1 : index
    %c0_4 = arith.constant 0 : index
    %3 = vector.load %arg8[%c1, %c0_4] : memref<10x64xf32, #tpu.memory_space<vmem>>, vector<1x32xf32>
    %c2 = arith.constant 2 : index
    %c0_5 = arith.constant 0 : index
    %4 = vector.load %arg8[%c2, %c0_5] : memref<10x64xf32, #tpu.memory_space<vmem>>, vector<1x32xf32>
    %c3 = arith.constant 3 : index
    %c0_6 = arith.constant 0 : index
    %5 = vector.load %arg8[%c3, %c0_6] : memref<10x64xf32, #tpu.memory_space<vmem>>, vector<1x32xf32>
    %c4 = arith.constant 4 : index
    %c0_7 = arith.constant 0 : index
    %6 = vector.load %arg8[%c4, %c0_7] : memref<10x64xf32, #tpu.memory_space<vmem>>, vector<1x32xf32>
    %c5 = arith.constant 5 : index
    %c0_8 = arith.constant 0 : index
    %7 = vector.load %arg8[%c5, %c0_8] : memref<10x64xf32, #tpu.memory_space<vmem>>, vector<1x32xf32>
    %c6 = arith.constant 6 : index
    %c0_9 = arith.constant 0 : index
    %8 = vector.load %arg8[%c6, %c0_9] : memref<10x64xf32, #tpu.memory_space<vmem>>, vector<1x64xf32>
    %c7 = arith.constant 7 : index
    %c0_10 = arith.constant 0 : index
    %9 = vector.load %arg8[%c7, %c0_10] : memref<10x64xf32, #tpu.memory_space<vmem>>, vector<1x32xf32>
    %c8 = arith.constant 8 : index
    %c0_11 = arith.constant 0 : index
    %10 = vector.load %arg8[%c8, %c0_11] : memref<10x64xf32, #tpu.memory_space<vmem>>, vector<1x32xf32>
    %c9 = arith.constant 9 : index
    %c0_12 = arith.constant 0 : index
    %11 = vector.load %arg8[%c9, %c0_12] : memref<10x64xf32, #tpu.memory_space<vmem>>, vector<1x32xf32>
    %c0_13 = arith.constant 0 : index
    %c0_14 = arith.constant 0 : index
    %12 = vector.load %arg2[%c0_13, %c0_14] : memref<32x32xf32, #tpu.memory_space<vmem>>, vector<32x32xf32>
    %cst = arith.constant dense<0.000000e+00> : vector<8x32xf32>
    %13 = tpu.matmul %1, %12, %cst {dimension_numbers = #tpu.dot_dimension_numbers<[1], [0], [0], [1], [0, 0, 1, 1], [], []>} : vector<8x32xf32>, vector<32x32xf32>, vector<8x32xf32> -> vector<8x32xf32>
    %14 = vector.broadcast %2 : vector<1x32xf32> to vector<8x32xf32>
    %15 = arith.addf %13, %14 : vector<8x32xf32>
    %c0_15 = arith.constant 0 : index
    %c0_16 = arith.constant 0 : index
    %16 = vector.load %arg3[%c0_15, %c0_16] : memref<32x32xf32, #tpu.memory_space<vmem>>, vector<32x32xf32>
    %cst_17 = arith.constant dense<0.000000e+00> : vector<8x32xf32>
    %17 = tpu.matmul %1, %16, %cst_17 {dimension_numbers = #tpu.dot_dimension_numbers<[1], [0], [0], [1], [0, 0, 1, 1], [], []>} : vector<8x32xf32>, vector<32x32xf32>, vector<8x32xf32> -> vector<8x32xf32>
    %18 = vector.broadcast %3 : vector<1x32xf32> to vector<8x32xf32>
    %19 = arith.addf %17, %18 : vector<8x32xf32>
    %c0_18 = arith.constant 0 : index
    %c0_19 = arith.constant 0 : index
    %20 = vector.load %arg4[%c0_18, %c0_19] : memref<32x32xf32, #tpu.memory_space<vmem>>, vector<32x32xf32>
    %cst_20 = arith.constant dense<0.000000e+00> : vector<8x32xf32>
    %21 = tpu.matmul %1, %20, %cst_20 {dimension_numbers = #tpu.dot_dimension_numbers<[1], [0], [0], [1], [0, 0, 1, 1], [], []>} : vector<8x32xf32>, vector<32x32xf32>, vector<8x32xf32> -> vector<8x32xf32>
    %22 = vector.broadcast %4 : vector<1x32xf32> to vector<8x32xf32>
    %23 = arith.addf %21, %22 : vector<8x32xf32>
    %24 = vector.shape_cast %15 : vector<8x32xf32> to vector<8x4x8xf32>
    %25 = tpu.transpose %24, [1, 0, 2] : vector<8x4x8xf32> -> vector<4x8x8xf32>
    %26 = vector.shape_cast %19 : vector<8x32xf32> to vector<8x4x8xf32>
    %27 = tpu.transpose %26, [1, 0, 2] : vector<8x4x8xf32> -> vector<4x8x8xf32>
    %28 = vector.shape_cast %23 : vector<8x32xf32> to vector<8x4x8xf32>
    %29 = tpu.transpose %28, [1, 0, 2] : vector<8x4x8xf32> -> vector<4x8x8xf32>
    "tpu.trace_start"() <{level = 10 : i32, message = "xtq,xsq->xts"}> : () -> ()
    %cst_21 = arith.constant dense<0.000000e+00> : vector<4x8x8xf32>
    %30 = tpu.matmul %25, %27, %cst_21 {dimension_numbers = #tpu.dot_dimension_numbers<[2], [2], [1], [1], [0, 0, 0, 1, 1, 1], [0], [0]>} : vector<4x8x8xf32>, vector<4x8x8xf32>, vector<4x8x8xf32> -> vector<4x8x8xf32>
    "tpu.trace_stop"() : () -> ()
    %cst_22 = arith.constant 0.353553385 : f32
    %31 = vector.broadcast %cst_22 : f32 to vector<4x8x8xf32>
    %32 = arith.mulf %30, %31 : vector<4x8x8xf32>
    %33 = vector.shape_cast %32 : vector<4x8x8xf32> to vector<4x1x8x8xf32>
    %c0_23 = arith.constant 0 : index
    %c0_24 = arith.constant 0 : index
    %c0_25 = arith.constant 0 : index
    %c0_26 = arith.constant 0 : index
    %34 = vector.load %arg10[%c0_23, %c0_24, %c0_25, %c0_26] : memref<4x1x8x8xf32, #tpu.memory_space<vmem>>, vector<4x1x8x8xf32>
    tpu.vector_store %arg10[%c0_23, %c0_24, %c0_25, %c0_26], %33 {strides = array<i32>} : memref<4x1x8x8xf32, #tpu.memory_space<vmem>>, vector<4x1x8x8xf32>,
    %cst_27 = arith.constant dense<0xFF800000> : vector<4x8xf32>
    %35 = vector.multi_reduction <maximumf>, %32, %cst_27 [2] : vector<4x8x8xf32> to vector<4x8xf32>
    %36 = vector.shape_cast %35 : vector<4x8xf32> to vector<4x8x1xf32>
    %37 = vector.broadcast %36 : vector<4x8x1xf32> to vector<4x8x8xf32>
    %38 = arith.subf %32, %37 : vector<4x8x8xf32>
    %39 = math.exp %38 : vector<4x8x8xf32>
    %cst_28 = arith.constant dense<0.000000e+00> : vector<4x8xf32>
    %40 = vector.multi_reduction <add>, %39, %cst_28 [2] : vector<4x8x8xf32> to vector<4x8xf32>
    %41 = vector.shape_cast %40 : vector<4x8xf32> to vector<4x8x1xf32>
    %42 = tpu.reciprocal %41 : vector<4x8x1xf32> -> vector<4x8x1xf32>
    %43 = vector.broadcast %42 : vector<4x8x1xf32> to vector<4x8x8xf32>
    %44 = arith.mulf %39, %43 : vector<4x8x8xf32>
    "tpu.trace_start"() <{level = 10 : i32, message = "xts,xsv->xtv"}> : () -> ()
    %cst_29 = arith.constant dense<0.000000e+00> : vector<4x8x8xf32>
    %45 = tpu.matmul %44, %29, %cst_29 {dimension_numbers = #tpu.dot_dimension_numbers<[2], [1], [1], [2], [0, 0, 0, 1, 1, 2], [0], [0]>} : vector<4x8x8xf32>, vector<4x8x8xf32>, vector<4x8x8xf32> -> vector<4x8x8xf32>
    "tpu.trace_stop"() : () -> ()
    %46 = vector.shape_cast %45 : vector<4x8x8xf32> to vector<4x1x8x8xf32>
    %47 = tpu.transpose %46, [1, 2, 0, 3] : vector<4x1x8x8xf32> -> vector<1x8x4x8xf32>
    %48 = vector.shape_cast %47 : vector<1x8x4x8xf32> to vector<8x32xf32>
    %c0_30 = arith.constant 0 : index
    %c0_31 = arith.constant 0 : index
    %49 = vector.load %arg5[%c0_30, %c0_31] : memref<32x32xf32, #tpu.memory_space<vmem>>, vector<32x32xf32>
    %cst_32 = arith.constant dense<0.000000e+00> : vector<8x32xf32>
    %50 = tpu.matmul %48, %49, %cst_32 {dimension_numbers = #tpu.dot_dimension_numbers<[1], [0], [0], [1], [0, 0, 1, 1], [], []>} : vector<8x32xf32>, vector<32x32xf32>, vector<8x32xf32> -> vector<8x32xf32>
    %51 = vector.broadcast %5 : vector<1x32xf32> to vector<8x32xf32>
    %52 = arith.addf %50, %51 : vector<8x32xf32>
    %53 = arith.addf %52, %1 : vector<8x32xf32>
    %cst_33 = arith.constant dense<0.000000e+00> : vector<8xf32>
    %54 = vector.multi_reduction <add>, %53, %cst_33 [1] : vector<8x32xf32> to vector<8xf32>
    %55 = vector.shape_cast %54 : vector<8xf32> to vector<8x1xf32>
    %cst_34 = arith.constant 3.200000e+01 : f32
    %56 = vector.broadcast %cst_34 : f32 to vector<8x1xf32>
    %57 = arith.divf %55, %56 : vector<8x1xf32>
    %58 = vector.broadcast %57 : vector<8x1xf32> to vector<8x32xf32>
    %59 = arith.subf %53, %58 : vector<8x32xf32>
    %60 = arith.mulf %59, %59 : vector<8x32xf32>
    %cst_35 = arith.constant dense<0.000000e+00> : vector<8xf32>
    %61 = vector.multi_reduction <add>, %60, %cst_35 [1] : vector<8x32xf32> to vector<8xf32>
    %62 = vector.shape_cast %61 : vector<8xf32> to vector<8x1xf32>
    %cst_36 = arith.constant 3.200000e+01 : f32
    %63 = vector.broadcast %cst_36 : f32 to vector<8x1xf32>
    %64 = arith.divf %62, %63 : vector<8x1xf32>
    %cst_37 = arith.constant 9.99999974E-6 : f32
    %65 = vector.broadcast %cst_37 : f32 to vector<8x1xf32>
    %66 = arith.addf %64, %65 : vector<8x1xf32>
    %67 = math.rsqrt %66 : vector<8x1xf32>
    %68 = vector.broadcast %67 : vector<8x1xf32> to vector<8x32xf32>
    %69 = arith.mulf %59, %68 : vector<8x32xf32>
    %70 = vector.broadcast %6 : vector<1x32xf32> to vector<8x32xf32>
    %71 = arith.mulf %69, %70 : vector<8x32xf32>
    %72 = vector.broadcast %7 : vector<1x32xf32> to vector<8x32xf32>
    %73 = arith.addf %71, %72 : vector<8x32xf32>
    %c0_38 = arith.constant 0 : index
    %c0_39 = arith.constant 0 : index
    %74 = vector.load %arg6[%c0_38, %c0_39] : memref<32x64xf32, #tpu.memory_space<vmem>>, vector<32x64xf32>
    %cst_40 = arith.constant dense<0.000000e+00> : vector<8x64xf32>
    %75 = tpu.matmul %73, %74, %cst_40 {dimension_numbers = #tpu.dot_dimension_numbers<[1], [0], [0], [1], [0, 0, 1, 1], [], []>} : vector<8x32xf32>, vector<32x64xf32>, vector<8x64xf32> -> vector<8x64xf32>
    %76 = vector.broadcast %8 : vector<1x64xf32> to vector<8x64xf32>
    %77 = arith.addf %75, %76 : vector<8x64xf32>
    %cst_41 = arith.constant 0.000000e+00 : f32
    %78 = vector.broadcast %cst_41 : f32 to vector<8x64xf32>
    %79 = arith.maximumf %77, %78 : vector<8x64xf32>
    %c0_42 = arith.constant 0 : index
    %c0_43 = arith.constant 0 : index
    %80 = vector.load %arg7[%c0_42, %c0_43] : memref<64x32xf32, #tpu.memory_space<vmem>>, vector<64x32xf32>
    %cst_44 = arith.constant dense<0.000000e+00> : vector<8x32xf32>
    %81 = tpu.matmul %79, %80, %cst_44 {dimension_numbers = #tpu.dot_dimension_numbers<[1], [0], [0], [1], [0, 0, 1, 1], [], []>} : vector<8x64xf32>, vector<64x32xf32>, vector<8x32xf32> -> vector<8x32xf32>
    %82 = vector.broadcast %9 : vector<1x32xf32> to vector<8x32xf32>
    %83 = arith.addf %81, %82 : vector<8x32xf32>
    %84 = arith.addf %83, %73 : vector<8x32xf32>
    %cst_45 = arith.constant dense<0.000000e+00> : vector<8xf32>
    %85 = vector.multi_reduction <add>, %84, %cst_45 [1] : vector<8x32xf32> to vector<8xf32>
    %86 = vector.shape_cast %85 : vector<8xf32> to vector<8x1xf32>
    %cst_46 = arith.constant 3.200000e+01 : f32
    %87 = vector.broadcast %cst_46 : f32 to vector<8x1xf32>
    %88 = arith.divf %86, %87 : vector<8x1xf32>
    %89 = vector.broadcast %88 : vector<8x1xf32> to vector<8x32xf32>
    %90 = arith.subf %84, %89 : vector<8x32xf32>
    %91 = arith.mulf %90, %90 : vector<8x32xf32>
    %cst_47 = arith.constant dense<0.000000e+00> : vector<8xf32>
    %92 = vector.multi_reduction <add>, %91, %cst_47 [1] : vector<8x32xf32> to vector<8xf32>
    %93 = vector.shape_cast %92 : vector<8xf32> to vector<8x1xf32>
    %cst_48 = arith.constant 3.200000e+01 : f32
    %94 = vector.broadcast %cst_48 : f32 to vector<8x1xf32>
    %95 = arith.divf %93, %94 : vector<8x1xf32>
    %cst_49 = arith.constant 9.99999974E-6 : f32
    %96 = vector.broadcast %cst_49 : f32 to vector<8x1xf32>
    %97 = arith.addf %95, %96 : vector<8x1xf32>
    %98 = math.rsqrt %97 : vector<8x1xf32>
    %99 = vector.broadcast %98 : vector<8x1xf32> to vector<8x32xf32>
    %100 = arith.mulf %90, %99 : vector<8x32xf32>
    %101 = vector.broadcast %10 : vector<1x32xf32> to vector<8x32xf32>
    %102 = arith.mulf %100, %101 : vector<8x32xf32>
    %103 = vector.broadcast %11 : vector<1x32xf32> to vector<8x32xf32>
    %104 = arith.addf %102, %103 : vector<8x32xf32>
    %105 = vector.shape_cast %104 : vector<8x32xf32> to vector<1x8x32xf32>
    %c0_50 = arith.constant 0 : index
    %c0_51 = arith.constant 0 : index
    %c0_52 = arith.constant 0 : index
    %106 = vector.load %arg9[%c0_50, %c0_51, %c0_52] : memref<1x8x32xf32, #tpu.memory_space<vmem>>, vector<1x8x32xf32>
    tpu.vector_store %arg9[%c0_50, %c0_51, %c0_52], %105 {strides = array<i32>} : memref<1x8x32xf32, #tpu.memory_space<vmem>>, vector<1x8x32xf32>,
    return
  }
  func.func @transform_0(%arg0: i32) -> (i32, i32, i32) {
    %c0_i32 = arith.constant 0 : i32
    %c0_i32_0 = arith.constant 0 : i32
    %c0_i32_1 = arith.constant 0 : i32
    return %arg0, %c0_i32, %c0_i32_0 : i32, i32, i32
  }
  func.func @transform_1(%arg0: i32) -> (i32, i32) {
    %c0_i32 = arith.constant 0 : i32
    %c0_i32_0 = arith.constant 0 : i32
    %c0_i32_1 = arith.constant 0 : i32
    return %c0_i32, %c0_i32_0 : i32, i32
  }
  func.func @transform_2(%arg0: i32) -> (i32, i32) {
    %c0_i32 = arith.constant 0 : i32
    %c0_i32_0 = arith.constant 0 : i32
    %c0_i32_1 = arith.constant 0 : i32
    return %c0_i32, %c0_i32_0 : i32, i32
  }
  func.func @transform_3(%arg0: i32) -> (i32, i32) {
    %c0_i32 = arith.constant 0 : i32
    %c0_i32_0 = arith.constant 0 : i32
    %c0_i32_1 = arith.constant 0 : i32
    return %c0_i32, %c0_i32_0 : i32, i32
  }
  func.func @transform_4(%arg0: i32) -> (i32, i32) {
    %c0_i32 = arith.constant 0 : i32
    %c0_i32_0 = arith.constant 0 : i32
    %c0_i32_1 = arith.constant 0 : i32
    return %c0_i32, %c0_i32_0 : i32, i32
  }
  func.func @transform_5(%arg0: i32) -> (i32, i32) {
    %c0_i32 = arith.constant 0 : i32
    %c0_i32_0 = arith.constant 0 : i32
    %c0_i32_1 = arith.constant 0 : i32
    return %c0_i32, %c0_i32_0 : i32, i32
  }
  func.func @transform_6(%arg0: i32) -> (i32, i32) {
    %c0_i32 = arith.constant 0 : i32
    %c0_i32_0 = arith.constant 0 : i32
    %c0_i32_1 = arith.constant 0 : i32
    return %c0_i32, %c0_i32_0 : i32, i32
  }
  func.func @transform_7(%arg0: i32) -> (i32, i32) {
    %c0_i32 = arith.constant 0 : i32
    %c0_i32_0 = arith.constant 0 : i32
    %c0_i32_1 = arith.constant 0 : i32
    return %c0_i32, %c0_i32_0 : i32, i32
  }
  func.func @transform_8(%arg0: i32) -> (i32, i32, i32) {
    %c0_i32 = arith.constant 0 : i32
    %c0_i32_0 = arith.constant 0 : i32
    %c0_i32_1 = arith.constant 0 : i32
    return %arg0, %c0_i32, %c0_i32_0 : i32, i32, i32
  }
  func.func @transform_9(%arg0: i32) -> (i32, i32, i32, i32) {
    %c0_i32 = arith.constant 0 : i32
    %c0_i32_0 = arith.constant 0 : i32
    %c0_i32_1 = arith.constant 0 : i32
    %c0_i32_2 = arith.constant 0 : i32
    return %c0_i32, %arg0, %c0_i32_0, %c0_i32_1 : i32, i32, i32, i32
  }
}

</mosaic_0001>

<bundles_post_ra>
// kernel: tpu_custom_call.1
= control target key start
LH: loop header
LB: loop body
LE: loop exit
PB: predicated region body
PF: predicated region fallthrough
CT: control target
= control target key end

     0   :  { %s3514_s0 = inlined_call_operand.hbm [shape: f32[2,8,32], index: 0, kind: input, shape index: {}]   ;;  %s3515_s1 = inlined_call_operand.vmem [shape: f32[32,32], index: 1, kind: input, shape index: {}]   ;;  %s3516_s2 = inlined_call_operand.vmem [shape: f32[32,32], index: 2, kind: input, shape index: {}]   ;;  %s3517_s3 = inlined_call_operand.vmem [shape: f32[32,32], index: 3, kind: input, shape index: {}]   ;;  %s3518_s4 = inlined_call_operand.hbm [shape: f32[32,32], index: 4, kind: input, shape index: {}]   ;;  %s3519_s5 = inlined_call_operand.hbm [shape: f32[32,64], index: 5, kind: input, shape index: {}]   ;;  %s3520_s6 = inlined_call_operand.vmem [shape: f32[64,32], index: 6, kind: input, shape index: {}]   ;;  %s3521_s7 = inlined_call_operand.vmem [shape: f32[10,64], index: 7, kind: input, shape index: {}]   ;;  %s3522_s8 = inlined_call_operand.hbm [shape: f32[2,8,32], index: 8, kind: output, shape index: {0}]   ;;  %s3523_s9 = inlined_call_operand.hbm [shape: f32[4,2,8,8], index: 9, kind: output, shape index: {1}]  }
   0x1   :  { %3530 = sst [smem:[#allocation16_spill]] %s3514_s0 }
   0x2   :  { %15 = vsyncpa [#allocation3], 0 }
   0x3   :  { %17 = vsyncpa [#allocation3 + $0x1], 0 }
   0x4   :  { %18 = vsyncpa [#allocation6], 0 }
   0x5   :  { %19 = vsyncpa [#allocation4], 0 }
   0x6   :  { %21 = vsyncpa [#allocation4 + $0x1], 0 }
   0x7   :  { %22 = vsyncpa [#allocation10], 0 }
   0x8   :  { %24 = vsyncpa [#allocation10 + $0x1], 0  ;;  %s2959_s30 = smov 0   ;;  %s2961_s10 = smov 0  }
   0x9   :  { %s2963_s11 = smov 0   ;;  %s2965_s12 = smov 0  }
   0xa LB: > { %s2980_s13 = sadd.s32 4294967295, %s2887_s12   ;;  %s2331_s14 = sadd.s32 4294967294, %s2887_s12   ;;  %s2887_s12 = sphi %s2965_s12, %s3552_s12   ;;  %s2883_s11 = sphi %s2963_s11, %s3551_s11   ;;  %s2879_s10 = sphi %s2961_s10, %s3550_s10   ;;  %s2875_s30 = sphi %s2959_s30, %s3549_s30  }
   0xb   : > { %p50_p0 = scmp.ne.s32.totalorder %s2879_s10, %s2875_s30  ;;  %p3524_p1 = scmp.eq.s32.totalorder %s2980_s13, 0 }
   0xc   : > { %p227_p3 = scmp.eq.s32.totalorder %s2331_s14, 1  ;;  %p2332_p5 = scmp.ge.s32.totalorder %s2887_s12, 1 }
   0xd   : > { %p2989_p4 = por %p3524_p1, %p50_p0  ;;  %p260_p7 = scmp.lt.s32.totalorder %s2887_s12, 3 }
   0xe   : > { %p2994_p6 = por %p227_p3, %p50_p0  ;;  %s2889_s18 = smov [#allocation5]  }
   0xf   : > { %s3531_s15 = scalar_select %p2989_p4, 1, 0 }
  0x10   : > { %s3532_s16 = scalar_select %p2994_p6, 1, 0 }
  0x11   : > { %p2999_p8 = pnand %p2332_p5, %p260_p7  ;;  %s281_s19 = sshll.u32 %s2889_s18, 4  ;;  %s3003_s19 = int_to_ptr.vmem [resolvable:$true] %s281_s19 }
  0x12   : > { %3533 = sst [smem:[#allocation15_spill]] %s3532_s16  ;;  %s2890_s21 = smov [#allocation7]  }
  0x13   : > { %p2606_p9 = pneg %p2999_p8  ;;  %s294_s22 = sshll.u32 %s2890_s21, 4  ;;  %s3014_s22 = int_to_ptr.vmem [resolvable:$true] %s294_s22 }
  0x14   : > { %s2699_s25 = scalar_lea.hbm %s3518_s4, 512 }
  0x15   : > { %p3010_p11 = pnand %p2606_p9, %p3524_p1  ;;  %p2700_p12 = scmp.ne.s32.totalorder %s3518_s4, %s2699_s25 }
  0x16   : > { %p2706_p5 = scmp.lt.u32.totalorder %s2699_s25, %s3518_s4 }
  0x17   : > { %p2701_p13 = pneg %p3010_p11 }
  0x19   : > { %p2702_p0 = pnand %p2701_p13, %p2700_p12 }
  0x1b   : > { %p2703_p3 = pneg %p2702_p0 }
  0x1d   : > { %p2708_p7 = pnand %p2706_p5, %p2703_p3 }
  0x1f   : > { %2711 = shalt.err (!%p2708_p7)
}
  0x20   : > { %s2712_s14 = scalar_lea.vmem %s3003_s19, 512  ;;  %p2720_p2 = scmp.lt.s32.totalorder %s3003_s19, %s3003_s19 }
  0x21   : > { %p2713_p9 = scmp.ne.s32.totalorder %s3003_s19, %s2712_s14  ;;  %p2721_p12 = scmp.lt.s32.totalorder %s2712_s14, %s2712_s14 }
  0x23   : > { %p2715_p10 = pnand %p2713_p9, %p2701_p13  ;;  %p2722_p0 = por %p2721_p12, %p2720_p2 }
  0x25   : > { %p2716_p1 = pneg %p2715_p10 }
  0x27   : > { %p2723_p6 = pnand %p2722_p0, %p2716_p1 }
  0x29   : > { %2726 = shalt.err (!%p2723_p6)
}
  0x2a   : > { %s2891_s18 = smov 128   ;;  %s2892_s21 = smov 8  }
  0x2b   : > { %2609 = dma.hbm_to_vmem [thread:$0]  (!%p3010_p11), %s3518_s4, 512, %s3003_s19, [#allocation6], %s2891_s18, %s2891_s18, %s2892_s21  }
  0x2c   : > { %s2727_s27 = scalar_lea.hbm %s3519_s5, 512 }
  0x2d   : > { %p2728_p2 = scmp.ne.s32.totalorder %s3519_s5, %s2727_s27  ;;  %p2734_p10 = scmp.lt.u32.totalorder %s2727_s27, %s3519_s5 }
  0x2f   : > { %p2730_p1 = pnand %p2728_p2, %p2701_p13 }
  0x31   : > { %p2731_p6 = pneg %p2730_p1 }
  0x33   : > { %p2736_p3 = pnand %p2734_p10, %p2731_p6 }
  0x35   : > { %2739 = shalt.err (!%p2736_p3)
}
  0x36   : > { %s2740_s19 = scalar_lea.vmem %s3014_s22, 512  ;;  %p2748_p12 = scmp.lt.s32.totalorder %s3014_s22, %s3014_s22 }
  0x37   : > { %p2741_p5 = scmp.ne.s32.totalorder %s3014_s22, %s2740_s19  ;;  %p2749_p0 = scmp.lt.s32.totalorder %s2740_s19, %s2740_s19 }
  0x39   : > { %p2743_p7 = pnand %p2741_p5, %p2701_p13  ;;  %p2750_p2 = por %p2749_p0, %p2748_p12 }
  0x3b   : > { %p2744_p9 = pneg %p2743_p7 }
  0x3d   : > { %p2751_p1 = pnand %p2750_p2, %p2744_p9 }
  0x3f   : > { %2754 = shalt.err (!%p2751_p1)
}
  0x40   : > { %2612 = dma.hbm_to_vmem [thread:$0]  (!%p3010_p11), %s3519_s5, 512, %s3014_s22, [#allocation6], %s2891_s18, %s2891_s18, %s2892_s21  }
  0x41   : > { %s3069_s24 = sadd.s32 1, %s2887_s12   ;;  %s37_s20 = sadd.s32 1, %s2883_s11 }
  0x42   : > { %s34_s25 = ssub.s32 %s2887_s12, %s3069_s24  ;;  %p44_p13 = scmp.ne.s32.totalorder %s2883_s11, %s2879_s10 }
  0x43   : > { %p35_p6 = scmp.eq.s32.totalorder %s34_s25, 0  ;;  %p45_p10 = scmp.eq.s32.totalorder %s2887_s12, 0 }
  0x44   : > { %p3536_p3 = scmp.eq.s32.totalorder %s2980_s13, 1  ;;  %p2626_p7 = scmp.lt.s32.totalorder %s2887_s12, 2 }
  0x45   : > { %s3085_s27 = scalar_select %p35_p6, %s2883_s11, %s37_s20  }
  0x46   : > { %p3079_p5 = por %p3536_p3, %p44_p13  ;;  %p46_p9 = por %p45_p10, %p44_p13 }
  0x47   : > { %s314_s28 = sand.u32 1, %s2883_s11   ;;  %s2337_s22 = sshll.u32 %s2887_s12, 7 }
  0x48   : > { %s3537_s26 = scalar_select %p3079_p5, 1, 0 }
  0x49   : > { %s2336_s29 = sshll.u32 %s314_s28, 3  ;;  %s3538_s0 = sld [smem:[#allocation16_spill]] }
  0x4a   : > { %s318_s19 = scalar_lea.vmem [#allocation2], %s2336_s29  ;;  %p3096_p11 = pnand %p2626_p7, %p46_p9 }
  0x4b   : > { %s325_s16 = sshll.u32 %s318_s19, 4  ;;  %s315_s20 = scalar_lea.sflag [#allocation3], %s314_s28  ;;  %s3094_s16 = int_to_ptr.vmem [resolvable:$true] %s325_s16 }
  0x4c   : > { %p2757_p0 = pneg %p3096_p11 }
  0x4f   : > { %s3092_s14 = scalar_lea.hbm %s3538_s0, %s2337_s22  ;;  %s2760_s18 = scalar_lea.hbm %s3538_s0, 256 }
  0x50   : > { %s2755_s25 = scalar_lea.hbm %s3092_s14, 128  ;;  %p2761_p13 = scmp.lt.u32.totalorder %s3092_s14, %s3538_s0 }
  0x51   : > { %p2756_p12 = scmp.ne.s32.totalorder %s3092_s14, %s2755_s25  ;;  %p2762_p6 = scmp.lt.u32.totalorder %s2760_s18, %s2755_s25 }
  0x52   : > { %p2764_p3 = scmp.lt.u32.totalorder %s2755_s25, %s3092_s14 }
  0x53   : > { %p2758_p2 = pnand %p2757_p0, %p2756_p12  ;;  %p2763_p10 = por %p2762_p6, %p2761_p13 }
  0x55   : > { %p2759_p1 = pneg %p2758_p2  ;;  %p2765_p7 = por %p2764_p3, %p2763_p10 }
  0x57   : > { %p2766_p9 = pnand %p2765_p7, %p2759_p1 }
  0x59   : > { %2769 = shalt.err (!%p2766_p9)
}
  0x5a   : > { %s2770_s28 = scalar_lea.vmem %s3094_s16, 128  ;;  %s2893_s22 = smov [#allocation2]  }
  0x5b   : > { %p2771_p12 = scmp.ne.s32.totalorder %s3094_s16, %s2770_s28  ;;  %s2775_s29 = sshll.u32 %s2893_s22, 4  ;;  %s2776_s29 = int_to_ptr.vmem [resolvable:$false] %s2775_s29 }
  0x5c   : > { %s2777_s21 = scalar_lea.vmem %s2776_s29, 256  ;;  %p2778_p4 = scmp.lt.s32.totalorder %s3094_s16, %s2776_s29 }
  0x5d   : > { %p2773_p2 = pnand %p2771_p12, %p2757_p0  ;;  %p2779_p13 = scmp.lt.s32.totalorder %s2777_s21, %s2770_s28 }
  0x5f   : > { %p2774_p5 = pneg %p2773_p2  ;;  %p2780_p6 = por %p2779_p13, %p2778_p4 }
  0x61   : > { %p2781_p10 = pnand %p2780_p6, %p2774_p5 }
  0x63   : > { %2784 = shalt.err (!%p2781_p10)
}
  0x64   : > { %2616 = dma.hbm_to_vmem [thread:$0]  (!%p3096_p11), %s3092_s14, 128, %s3094_s16, %s315_s20  }
  0x65   : > { %334 = sbr.rel (%p2999_p8) target bundleno = 2675 (0xa73), region = 52  ;;  %s3128_s25 = sand.u32 (!%p2999_p8), 1, %s2879_s10  }
  0x66   : > { %s3529_s18 = sshll.u32 (!%p2999_p8), %s3128_s25, 3  ;;  %s337_s19 = scalar_lea.sflag (!%p2999_p8), [#allocation3], %s3128_s25 }
  0x67   : > { %s340_s28 = scalar_lea.vmem (!%p2999_p8), [#allocation2], %s3529_s18  ;;  %p3540_p4 = scmp.ne.s32.totalorder (!%p2999_p8), %s3531_s15, 0 }
  0x6c   : > { %2858 = dma.done.wait (%p3540_p4), %s337_s19, 128  }
  0x6d   : > { %2860 = vsyncadd (%p3540_p4), %s337_s19, 4294967168  ;;  %p3541_p5 = scmp.eq.s32.totalorder %s2980_s13, 0 }
  0x6f   : > { %2862 = dma.done.wait (%p3541_p5), [#allocation6], 1024   ;;  %p3542_p8 = pmov %p3541_p5 }
  0x70   : > { %v2894_v0 = vmov 0.0|0.0   ;;  %vm2895_vm0 = vmmov 0   ;;  %v2896_v1 = vmov 0.0   ;;  %v399_v2 = vld [vmem:[%s3515_s1] sm:$0xff]  ;;  %v400_v3 = vld [vmem:[%s3515_s1 + $0x8] sm:$0xff]  ;;  %v401_v4 = vld [vmem:[%s3515_s1 + $0x10] sm:$0xff]  ;;  %v652_v31 = vlaneseq }
  0x71   : > { %2864 = vsyncadd (%p3542_p8), [#allocation6], 4294966272  ;;  %2550 = vmatprep.subr.bf16.mxu1 %v2894_v0  ;;  %2444 = vmatprep.mubr.msk.f32.mxu1 %vm2895_vm0, %v2896_v1  ;;  %v2551_v5 = vpack.c.bf16 %v400_v3, %v399_v2  ;;  %v402_v6 = vld [vmem:[%s3515_s1 + $0x18] sm:$0xff]  ;;  %v481_v8 = vld [vmem:[%s3516_s2] sm:$0xff]  ;;  %vm407_vm1 = vcmask 261120   ;;  %s2897_s29 = smov 120  }
  0x72   : > { %2562 = vmatprep.subr.bf16.mxu0 %v2894_v0  ;;  %2466 = vmatprep.mubr.msk.f32.mxu0 %vm2895_vm0, %v2896_v1  ;;  %v2554_v7 = vpack.c.bf16 %v402_v6, %v401_v4  ;;  %v482_v9 = vld [vmem:[%s3516_s2 + $0x8] sm:$0xff]  ;;  %v483_v12 = vld [vmem:[%s3516_s2 + $0x10] sm:$0xff]  ;;  %v484_v13 = vld [vmem:[%s3516_s2 + $0x18] sm:$0xff]  ;;  %s2898_s21 = smov 104   ;;  %s2899_s19 = smov 112   ;;  %v653_v36 = vshrl.u32 %v652_v31, 7 }
  0x73   : > { %2552 = vmatpush3.bf16.msra.mxu1 %v2551_v5  ;;  %v3167_v10 = vld [vmem:[%s340_s28] sm:$0xff]  ;;  %v2557_v11 = vpack.c.bf16 %v482_v9, %v481_v8  ;;  %v2560_v14 = vpack.c.bf16 %v484_v13, %v483_v12  ;;  %v561_v26 = vld [vmem:[%s3517_s3 + $0x10] sm:$0xff]  ;;  %v562_v27 = vld [vmem:[%s3517_s3 + $0x18] sm:$0xff]  ;;  %v2900_v29 = vmov 1983009808   ;;  %vm1075_vm2 = vcmask 64512  }
  0x74   : > { %2553 = vmatprep.subr.bf16.mxu1 %v2894_v0  ;;  %v2344_v15 = vld [vmem:[%s3521_s7] ss:$0 sm:$0xff]  ;;  %v560_v20 = vld [vmem:[%s3517_s3 + $0x8] sm:$0xff]  ;;  %v2346_v21 = vld [vmem:[%s3521_s7 + $0x1] ss:$0 sm:$0xff]  ;;  %v2566_v28 = vpack.c.bf16 %v562_v27, %v561_v26  ;;  %v650_v30 = vunpack.c.l.s4 %v2900_v29  ;;  %s2343_s15 = sshll.u32 %s3128_s25, 5 }
  0x75   : > { %v559_v19 = vld [vmem:[%s3517_s3] sm:$0xff]  ;;  %v2901_v33 = vmov 1934713408   ;;  %s3280_s17 = scalar_lea.vmem [#allocation9], %s2343_s15  ;;  %s2903_s23 = smov 8   ;;  %vm1873_vm3 = vcmask 130048  }
  0x76   : > { %v2563_v22 = vpack.c.bf16 %v560_v20, %v559_v19  ;;  %v682_v34 = vunpack.c.l.s4 %v2901_v33  ;;  %v651_v35 = vunpack.c.0.s8 %v650_v30  ;;  %s2904_s20 = smov 24   ;;  %vm1875_vm4 = vcmask 195584   ;;  %s3528_s28 = sshll.u32 %s2980_s13, 7 }
  0x77   : > { %2555 = vmatpush3.bf16.msra.mxu1 %v2554_v7  ;;  %vm2077_vm5 = vcmask 523264   ;;  %s2182_s15 = scalar_lea.sflag [#allocation10], %s3128_s25  ;;  %p3543_p0 = scmp.ne.s32.totalorder %s3537_s26, 0 }
  0x78   : > { %2556 = vmatprep.subr.bf16.mxu1 %v2894_v0  ;;  %2564 = vmatpush3.bf16.msra.mxu0 %v2563_v22  ;;  %v683_v39 = vunpack.c.0.s8 %v682_v34  ;;  %v3221_v40 = vsub.s32 %v651_v35, %v653_v36  ;;  %s2905_s16 = smov [#allocation9]  }
  0x79   : > { %2565 = vmatprep.subr.bf16.mxu0 %v2894_v0 }
  0x7a   : > { %2445 = vmatmul.mubr.msk.f32.vlgmr.msra.gmra.mrb[0].mxu1 %vm407_vm1, %v3167_v10  ;;  %v3223_v47 = vsub.s32 %v683_v39, %v653_v36 }
  0x7b   : > { %2558 = vmatpush3.bf16.msra.mxu1 %v2557_v11  ;;  %2455 = vmatprep.mubr.msk.f32.mxu1 %vm2895_vm0, %v2896_v1 }
  0x7c   : > { %2559 = vmatprep.subr.bf16.mxu1 %v2894_v0  ;;  %2567 = vmatpush3.bf16.msra.mxu0 %v2566_v28 }
  0x7d   : > { %2479 = vmatprep.subr.mxu0 %v2896_v1 }
  0x7f   : > { %2561 = vmatpush3.bf16.msra.mxu1 %v2560_v14  ;;  %2467 = vmatmul.mubr.msk.f32.vlgmr.msra.gmra.mrb[0].mxu0 %vm407_vm1, %v3167_v10 }
  0x80   : > { %2469 = vmatprep.subr.mxu1 %v2896_v1  ;;  %2481 = vmatprep.mubr.msk.f32.mxu0 %vm2895_vm0, %v2896_v1 }
  0x82   : > { %2456 = vmatmul.mubr.msk.f32.vlgmr.msra.gmra.mrb[2].mxu1 %vm407_vm1, %v3167_v10 }
  0x83   : > { %2471 = vmatprep.mubr.msk.f32.mxu1 %vm2895_vm0, %v2896_v1 }
 0x14d   : > { %v477_v16 = vpop.f32.mrb[0].mxu1 }
 0x14e   : > { %v3189_v17 = vadd.f32 %v2344_v15, %v477_v16  ;;  %v2446_v18 = vpop.f32.mrb[1].mxu1 }
 0x150   : > { %638 = vrot.lane.b32.xlu1 %v3189_v17, %s2897_s29 }
 0x155   : > { %v555_v23 = vpop.f32.mrb[2].mxu1 }
 0x156   : > { %v556_v24 = vadd.f32 %v2346_v21, %v555_v23  ;;  %v2457_v25 = vpop.f32.mrb[3].mxu1 }
 0x158   : > { %790 = vrot.lane.b32.xlu1 %v556_v24, %s2898_s21  ;;  %784 = vrot.lane.b32.xlu0 %v556_v24, %s2897_s29 }
 0x15c   : > { %644 = vrot.lane.b32.xlu1 %v3189_v17, %s2898_s21  ;;  %787 = vrot.lane.b32.xlu0 %v556_v24, %s2899_s19 }
 0x160   : > { %641 = vrot.lane.b32.xlu0 %v3189_v17, %s2899_s19 }
 0x1c2   : > { %v639_v32 = vpop.permute.xlu1 %638 }
 0x1ca   : > { %v791_v37 = vpop.permute.xlu1 %790  ;;  %v785_v38 = vpop.permute.xlu0 %784 }
 0x1cb   : > { %v809_v41 = vcombine.low %v785_v38, %v791_v37  ;;  %v810_v42 = vcombine.high %v785_v38, %v791_v37 }
 0x1cd   : > { %v817_v48 = vrot.slane %v809_v41, %v3221_v40  ;;  %v824_v49 = vrot.slane %v810_v42, %v3221_v40 }
 0x1ce   : > { %v788_v43 = vpop.permute.xlu0 %787  ;;  %v645_v44 = vpop.permute.xlu1 %644 }
 0x1cf   : > { %v793_v45 = vcombine.low %v556_v24, %v788_v43  ;;  %v794_v46 = vcombine.high %v556_v24, %v788_v43  ;;  %v663_v52 = vcombine.low %v639_v32, %v645_v44  ;;  %v664_v53 = vcombine.high %v639_v32, %v645_v44 }
 0x1d1   : > { %v801_v50 = vrot.slane %v793_v45, %v3221_v40  ;;  %v808_v51 = vrot.slane %v794_v46, %v3221_v40  ;;  %v671_v3 = vrot.slane %v663_v52, %v3221_v40  ;;  %v678_v4 = vrot.slane %v664_v53, %v3221_v40 }
 0x1d2   : > { %v642_v54 = vpop.permute.xlu0 %641 }
 0x1d3   : > { %v825_v55 = vcombine.low %v801_v50, %v817_v48  ;;  %v826_v56 = vcombine.high %v801_v50, %v817_v48  ;;  %v841_v57 = vcombine.low %v808_v51, %v824_v49  ;;  %v842_v58 = vcombine.high %v808_v51, %v824_v49 }
 0x1d4   : > { %v647_v59 = vcombine.low %v3189_v17, %v642_v54  ;;  %v648_v60 = vcombine.high %v3189_v17, %v642_v54 }
 0x1d5   : > { %v833_v61 = vrot.slane %v825_v55, %v3223_v47  ;;  %v840_v62 = vrot.slane %v826_v56, %v3223_v47  ;;  %v849_v63 = vrot.slane %v841_v57, %v3223_v47  ;;  %v856_v2 = vrot.slane %v842_v58, %v3223_v47  ;;  %v633_v58 = vpop.f32.mrb[0].mxu0 }
 0x1d6   : > { %v655_v5 = vrot.slane %v647_v59, %v3221_v40  ;;  %v662_v6 = vrot.slane %v648_v60, %v3221_v40  ;;  %v2468_v59 = vpop.f32.mrb[1].mxu0 }
 0x1d7   : > { %v861_v7 = vcombine.low %v833_v61, %v840_v62  ;;  %v2352_v8 = vcombine.high %v833_v61, %v840_v62  ;;  %v877_v9 = vcombine.low %v849_v63, %v856_v2  ;;  %v2353_v11 = vcombine.high %v849_v63, %v856_v2 }
 0x1d8   : > { %v679_v12 = vcombine.low %v655_v5, %v671_v3  ;;  %v680_v13 = vcombine.high %v655_v5, %v671_v3  ;;  %v695_v14 = vcombine.low %v662_v6, %v678_v4  ;;  %v696_v15 = vcombine.high %v662_v6, %v678_v4 }
 0x1d9   : > { %v868_v16 = vrot.slane %v861_v7, %v3221_v40  ;;  %v876_v17 = vrot.slane %v2352_v8, %v3221_v40  ;;  %v884_v18 = vrot.slane %v877_v9, %v3221_v40  ;;  %v892_v19 = vrot.slane %v2353_v11, %v3221_v40 }
 0x1da   : > { %v687_v20 = vrot.slane %v679_v12, %v3223_v47  ;;  %v694_v21 = vrot.slane %v680_v13, %v3223_v47  ;;  %v703_v22 = vrot.slane %v695_v14, %v3223_v47  ;;  %v710_v23 = vrot.slane %v696_v15, %v3223_v47  ;;  %v2348_v15 = vld [vmem:[%s3521_s7 + $0x2] ss:$0 sm:$0xff] }
 0x1db   : > { %v893_v24 = vcombine.low %v868_v16, %v876_v17  ;;  %v894_v25 = vcombine.high %v868_v16, %v876_v17  ;;  %v909_v26 = vcombine.low %v884_v18, %v892_v19  ;;  %v910_v27 = vcombine.high %v884_v18, %v892_v19 }
 0x1dc   : > { %v715_v28 = vcombine.low %v687_v20, %v694_v21  ;;  %v2350_v29 = vcombine.high %v687_v20, %v694_v21  ;;  %v731_v30 = vcombine.low %v703_v22, %v710_v23  ;;  %v2351_v31 = vcombine.high %v703_v22, %v710_v23 }
 0x1dd   : > { %v901_v32 = vrot.slane %v893_v24, %v3223_v47  ;;  %v917_v33 = vrot.slane %v909_v26, %v3223_v47  ;;  %v908_v34 = vrot.slane %v894_v25, %v3223_v47  ;;  %v924_v35 = vrot.slane %v910_v27, %v3223_v47 }
 0x1de   : > { %v722_v36 = vrot.slane %v715_v28, %v3221_v40  ;;  %v730_v37 = vrot.slane %v2350_v29, %v3221_v40  ;;  %v738_v38 = vrot.slane %v731_v30, %v3221_v40  ;;  %v746_v39 = vrot.slane %v2351_v31, %v3221_v40 }
 0x1df   : > { %v925_v41 = vcombine.low %v901_v32, %v917_v33  ;;  %v927_v42 = vcombine.low %v908_v34, %v924_v35  ;;  %v926_v54 = vcombine.high %v901_v32, %v917_v33  ;;  %v928_v56 = vcombine.high %v908_v34, %v924_v35 }
 0x1e0   : > { %v747_v43 = vcombine.low %v722_v36, %v730_v37  ;;  %v748_v44 = vcombine.high %v722_v36, %v730_v37  ;;  %v763_v45 = vcombine.low %v738_v38, %v746_v39  ;;  %v764_v46 = vcombine.high %v738_v38, %v746_v39 }
 0x1e1   : > { %2470 = vmatpush3.xpose.msk.msra.mxu1 %vm1075_vm2, %v925_v41  ;;  %2480 = vmatpush3.xpose.msk.msra.mxu0 %vm1075_vm2, %v927_v42  ;;  %v634_v16 = vadd.f32 %v2348_v15, %v633_v58 }
 0x1e2   : > { %2474 = vmatprep.subr.mxu1 %v2896_v1  ;;  %v755_v48 = vrot.slane %v747_v43, %v3223_v47  ;;  %v771_v49 = vrot.slane %v763_v45, %v3223_v47  ;;  %v762_v50 = vrot.slane %v748_v44, %v3223_v47  ;;  %v778_v51 = vrot.slane %v764_v46, %v3223_v47 }
 0x1e3   : > { %2489 = vmatprep.subr.mxu0 %v2896_v1 }
 0x1e4   : > { %v779_v52 = vcombine.low %v755_v48, %v771_v49  ;;  %v781_v53 = vcombine.low %v762_v50, %v778_v51  ;;  %v780_v55 = vcombine.high %v755_v48, %v771_v49  ;;  %v782_v57 = vcombine.high %v762_v50, %v778_v51 }
 0x1e6   : > { %2472 = vmatmul.mubr.msk.f32.vlgmr.msra.gmra.mrb[4].mxu1 %vm1075_vm2, %v779_v52  ;;  %2482 = vmatmul.mubr.msk.f32.vlgmr.msra.gmra.mrb[2].mxu0 %vm1075_vm2, %v781_v53 }
 0x1e7   : > { %2475 = vmatpush3.xpose.msk.msra.mxu1 %vm1075_vm2, %v926_v54  ;;  %2476 = vmatprep.mubr.msk.f32.mxu1 %vm2895_vm0, %v2896_v1 }
 0x1e8   : > { %2484 = vmatprep.subr.mxu1 %v2896_v1  ;;  %2491 = vmatprep.mubr.msk.f32.mxu0 %vm2895_vm0, %v2896_v1 }
 0x1ea   : > { %2477 = vmatmul.mubr.msk.f32.vlgmr.msra.gmra.mrb[6].mxu1 %vm1075_vm2, %v780_v55 }
 0x1eb   : > { %2485 = vmatpush3.xpose.msk.msra.mxu1 %vm1075_vm2, %v928_v56  ;;  %2486 = vmatprep.mubr.msk.f32.mxu1 %vm2895_vm0, %v2896_v1 }
 0x1ec   : > { %2494 = vmatprep.subr.mxu1 %v2896_v1 }
 0x1ee   : > { %2487 = vmatmul.mubr.msk.f32.vlgmr.msra.gmra.mrb[8].mxu1 %vm1075_vm2, %v782_v57 }
 0x1ef   : > { %2496 = vmatprep.mubr.msk.f32.mxu1 %vm2895_vm0, %v2896_v1 }
 0x2b9   : > { %v1148_v60 = vpop.f32.mrb[4].mxu1  ;;  %v1300_v61 = vpop.f32.mrb[2].mxu0 }
 0x2ba   : > { %v1380_v62 = vmul.f32 0.35355338, %v1148_v60  ;;  %v1382_v63 = vmul.f32 0.35355338, %v1300_v61  ;;  %v2473_v2 = vpop.f32.mrb[5].mxu1  ;;  %v2483_v3 = vpop.f32.mrb[3].mxu0 }
 0x2bc   : > { %1384 = vst.msk [vmem:[%s3280_s17] sm:$0xff] %vm1075_vm2, %v1380_v62  ;;  %1386 = vst.msk [vmem:[%s3280_s17 + $0x10] sm:$0xff] %vm1075_vm2, %v1382_v63  ;;  %v1388_v4 = vsel %vm1075_vm2, %v1380_v62, -inf  ;;  %v1394_v8 = vsel %vm1075_vm2, %v1382_v63, -inf }
 0x2bd   : > { %1389 = vmax.xlane.f32.xlu0 %v1388_v4  ;;  %v1224_v5 = vpop.f32.mrb[6].mxu1 }
 0x2be   : > { %v1381_v6 = vmul.f32 0.35355338, %v1224_v5  ;;  %v2478_v7 = vpop.f32.mrb[7].mxu1 }
 0x2c0   : > { %1385 = vst.msk [vmem:[%s3280_s17 + $0x8] sm:$0xff] %vm1075_vm2, %v1381_v6  ;;  %v1391_v9 = vsel %vm1075_vm2, %v1381_v6, -inf }
 0x2c1   : > { %1395 = vmax.xlane.f32.xlu0 %v1394_v8  ;;  %1392 = vmax.xlane.f32.xlu1 %v1391_v9  ;;  %v1376_v11 = vpop.f32.mrb[8].mxu1 }
 0x2c2   : > { %v1383_v12 = vmul.f32 0.35355338, %v1376_v11  ;;  %v2488_v13 = vpop.f32.mrb[9].mxu1 }
 0x2c4   : > { %1387 = vst.msk [vmem:[%s3280_s17 + $0x18] sm:$0xff] %vm1075_vm2, %v1383_v12  ;;  %v1397_v14 = vsel %vm1075_vm2, %v1383_v12, -inf }
 0x2c5   : > { %1398 = vmax.xlane.f32.xlu0 %v1397_v14 }
 0x2d2   : > { %930 = vrot.lane.b32.xlu1 %v634_v16, %s2897_s29  ;;  %s2902_s29 = smov 16  }
 0x34a   : > { %v1390_v17 = vpop.xlane.xlu0 %1389 }
 0x34b   : > { %v1400_v18 = vsub.f32 %v1380_v62, %v1390_v17 }
 0x34d   : > { %v1404_v19 = vmul.f32 1.442695, %v1400_v18 }
 0x34e   : > { %v1396_v20 = vpop.xlane.xlu0 %1395  ;;  %v1393_v21 = vpop.xlane.xlu1 %1392 }
 0x34f   : > { %2679 = vpow2.f32 %v1404_v19  ;;  %v1402_v22 = vsub.f32 %v1382_v63, %v1396_v20  ;;  %v1401_v23 = vsub.f32 %v1381_v6, %v1393_v21 }
 0x351   : > { %v1408_v24 = vmul.f32 1.442695, %v1402_v22  ;;  %v1406_v25 = vmul.f32 1.442695, %v1401_v23 }
 0x352   : > { %v1399_v26 = vpop.xlane.xlu0 %1398  ;;  %v931_v37 = vpop.permute.xlu1 %930 }
 0x353   : > { %2681 = vpow2.f32 %v1408_v24  ;;  %v1403_v27 = vsub.f32 %v1383_v12, %v1399_v26 }
 0x354   : > { %2683 = vpow2.f32 %v1406_v25 }
 0x355   : > { %v1410_v28 = vmul.f32 1.442695, %v1403_v27 }
 0x357   : > { %2685 = vpow2.f32 %v1410_v28 }
 0x359   : > { %v3298_v29 = vpop.eup %2679 }
 0x35a   : > { %v1412_v30 = vsel %vm1075_vm2, %v3298_v29, 0.0 }
 0x35b   : > { %1413 = vadd.xlane.f32.xlu1 %v1412_v30  ;;  %v1878_v30 = vld [vmem:[#allocation5 + $0x8] sm:$0xff] }
 0x35d   : > { %v3302_v31 = vpop.eup %2681 }
 0x35e   : > { %v2684_v32 = vpop.eup %2683  ;;  %v1418_v33 = vsel %vm1075_vm2, %v3302_v31, 0.0 }
 0x35f   : > { %1419 = vadd.xlane.f32.xlu1 %v1418_v33  ;;  %v1415_v34 = vsel %vm1075_vm2, %v2684_v32, 0.0 }
 0x360   : > { %1416 = vadd.xlane.f32.xlu0 %v1415_v34 }
 0x361   : > { %v3307_v35 = vpop.eup %2685 }
 0x362   : > { %v1421_v36 = vsel %vm1075_vm2, %v3307_v35, 0.0 }
 0x364   : > { %1422 = vadd.xlane.f32.xlu0 %v1421_v36 }
 0x370   : > { %936 = vrot.lane.b32.xlu1 %v634_v16, %s2898_s21 }
 0x37a   : > { %933 = vrot.lane.b32.xlu0 %v634_v16, %s2899_s19  ;;  %s3429_s19 = scalar_lea.hbm %s3523_s9, %s3528_s28 }
 0x3e8   : > { %v1414_v38 = vpop.xlane.xlu1 %1413 }
 0x3e9   : > { %2687 = vrcp.f32 %v1414_v38 }
 0x3ec   : > { %v1420_v39 = vpop.xlane.xlu1 %1419 }
 0x3ed   : > { %v1417_v41 = vpop.xlane.xlu0 %1416 }
 0x3ee   : > { %2689 = vrcp.f32 %v1417_v41 }
 0x3ef   : > { %2691 = vrcp.f32 %v1420_v39 }
 0x3f0   : > { %v937_v42 = vpop.permute.xlu1 %936 }
 0x3f1   : > { %v1423_v43 = vpop.xlane.xlu0 %1422  ;;  %v955_v44 = vcombine.low %v931_v37, %v937_v42  ;;  %v956_v45 = vcombine.high %v931_v37, %v937_v42 }
 0x3f2   : > { %2693 = vrcp.f32 %v1423_v43 }
 0x3f3   : > { %v963_v50 = vrot.slane %v955_v44, %v3221_v40  ;;  %v970_v51 = vrot.slane %v956_v45, %v3221_v40  ;;  %v2688_v8 = vpop.eup %2687 }
 0x3f4   : > { %v1428_v23 = vmul.f32 %v2688_v8, %v3298_v29  ;;  %v1877_v29 = vld [vmem:[#allocation5] sm:$0xff] }
 0x3f5   : > { %v934_v46 = vpop.permute.xlu0 %933 }
 0x3f6   : > { %v939_v48 = vcombine.low %v634_v16, %v934_v46  ;;  %v940_v49 = vcombine.high %v634_v16, %v934_v46 }
 0x3f8   : > { %v947_v52 = vrot.slane %v939_v48, %v3221_v40  ;;  %v954_v53 = vrot.slane %v940_v49, %v3221_v40  ;;  %v2690_v14 = vpop.eup %2689 }
 0x3f9   : > { %v2692_v17 = vpop.eup %2691  ;;  %v1429_v24 = vmul.f32 %v2690_v14, %v2684_v32 }
 0x3fa   : > { %v971_v54 = vcombine.low %v947_v52, %v963_v50  ;;  %v972_v55 = vcombine.high %v947_v52, %v963_v50  ;;  %v987_v56 = vcombine.low %v954_v53, %v970_v51  ;;  %v988_v57 = vcombine.high %v954_v53, %v970_v51 }
 0x3fb   : > { %v1430_v27 = vmul.f32 %v2692_v17, %v3302_v31  ;;  %v2569_v31 = vpack.c.bf16 %v1878_v30, %v1877_v29 }
 0x3fc   : > { %v979_v58 = vrot.slane %v971_v54, %v3223_v47  ;;  %v986_v59 = vrot.slane %v972_v55, %v3223_v47  ;;  %v995_v60 = vrot.slane %v987_v56, %v3223_v47  ;;  %v1002_v61 = vrot.slane %v988_v57, %v3223_v47  ;;  %v2694_v22 = vpop.eup %2693  ;;  %v1879_v54 = vld [vmem:[#allocation5 + $0x10] sm:$0xff]  ;;  %v1880_v55 = vld [vmem:[#allocation5 + $0x18] sm:$0xff] }
 0x3fd   : > { %v1431_v28 = vmul.f32 %v2694_v22, %v3307_v35 }
 0x3fe   : > { %v1007_v62 = vcombine.low %v979_v58, %v986_v59  ;;  %v2354_v63 = vcombine.high %v979_v58, %v986_v59  ;;  %v1023_v2 = vcombine.low %v995_v60, %v1002_v61  ;;  %v2355_v3 = vcombine.high %v995_v60, %v1002_v61 }
 0x3ff   : > { %v2572_v60 = vpack.c.bf16 %v1880_v55, %v1879_v54  ;;  %v2372_v54 = vld [vmem:[%s3521_s7 + $0x4] ss:$0 sm:$0xff] }
 0x400   : > { %v1014_v4 = vrot.slane %v1007_v62, %v3221_v40  ;;  %v1022_v5 = vrot.slane %v2354_v63, %v3221_v40  ;;  %v1030_v6 = vrot.slane %v1023_v2, %v3221_v40  ;;  %v1038_v7 = vrot.slane %v2355_v3, %v3221_v40 }
 0x402   : > { %v1039_v9 = vcombine.low %v1014_v4, %v1022_v5  ;;  %v1055_v11 = vcombine.low %v1030_v6, %v1038_v7  ;;  %v1040_v12 = vcombine.high %v1014_v4, %v1022_v5  ;;  %v1056_v13 = vcombine.high %v1030_v6, %v1038_v7 }
 0x404   : > { %v1047_v15 = vrot.slane %v1039_v9, %v3223_v47  ;;  %v1063_v16 = vrot.slane %v1055_v11, %v3223_v47  ;;  %v1054_v18 = vrot.slane %v1040_v12, %v3223_v47  ;;  %v1070_v19 = vrot.slane %v1056_v13, %v3223_v47 }
 0x406   : > { %v1071_v20 = vcombine.low %v1047_v15, %v1063_v16  ;;  %v1072_v21 = vcombine.high %v1047_v15, %v1063_v16  ;;  %v1073_v25 = vcombine.low %v1054_v18, %v1070_v19  ;;  %v1074_v26 = vcombine.high %v1054_v18, %v1070_v19 }
 0x408   : > { %2490 = vmatpush3.msra.mxu0 %v1071_v20  ;;  %2495 = vmatpush3.msra.mxu1 %v1072_v21 }
 0x409   : > { %2492 = vmatmul.mubr.msk.f32.vlgmr.msra.gmra.mrb[4].mxu0 %vm1075_vm2, %v1428_v23  ;;  %2497 = vmatmul.mubr.msk.f32.vlgmr.msra.gmra.mrb[10].mxu1 %vm1075_vm2, %v1429_v24  ;;  %v2370_v24 = vld [vmem:[%s3521_s7 + $0x3] ss:$0 sm:$0xff] }
 0x40a   : > { %2499 = vmatprep.subr.mxu0 %v2896_v1  ;;  %2504 = vmatprep.subr.mxu1 %v2896_v1 }
 0x40b   : > { %2500 = vmatpush3.msra.mxu0 %v1073_v25  ;;  %2505 = vmatpush3.msra.mxu1 %v1074_v26 }
 0x40c   : > { %2501 = vmatprep.mubr.msk.f32.mxu0 %vm2895_vm0, %v2896_v1  ;;  %2506 = vmatprep.mubr.msk.f32.mxu1 %vm2895_vm0, %v2896_v1 }
 0x40d   : > { %2502 = vmatmul.mubr.msk.f32.vlgmr.msra.gmra.mrb[6].mxu0 %vm1075_vm2, %v1430_v27  ;;  %2507 = vmatmul.mubr.msk.f32.vlgmr.msra.gmra.mrb[12].mxu1 %vm1075_vm2, %v1431_v28 }
 0x40e   : > { %2568 = vmatprep.subr.bf16.mxu0 %v2894_v0  ;;  %2517 = vmatprep.mubr.msk.f32.mxu0 %vm2895_vm0, %v2896_v1 }
 0x40f   : > { %2574 = vmatprep.subr.bf16.mxu1 %v2894_v0  ;;  %2528 = vmatprep.mubr.msk.f32.mxu1 %vm2895_vm0, %v2896_v1 }
 0x410   : > { %2570 = vmatpush3.bf16.msra.mxu0 %v2569_v31 }
 0x411   : > { %2571 = vmatprep.subr.bf16.mxu0 %v2894_v0 }
 0x414   : > { %2573 = vmatpush3.bf16.msra.mxu0 %v2572_v60 }
 0x415   : > { %2580 = vmatprep.subr.bf16.mxu0 %v2894_v0 }
 0x4dc   : > { %v1501_v32 = vpop.f32.mrb[4].mxu0  ;;  %v1574_v33 = vpop.f32.mrb[10].mxu1 }
 0x4dd   : > { %v2493_v34 = vpop.f32.mrb[5].mxu0  ;;  %v2498_v35 = vpop.f32.mrb[11].mxu1 }
 0x4de   : > { %v1984_v35 = vld [vmem:[#allocation7 + $0x8] sm:$0xff] }
 0x4e0   : > { %v1647_v36 = vpop.f32.mrb[6].mxu0  ;;  %v1720_v37 = vpop.f32.mrb[12].mxu1 }
 0x4e1   : > { %v1724_v38 = vcombine.low %v1501_v32, %v1647_v36  ;;  %v1725_v39 = vcombine.high %v1501_v32, %v1647_v36  ;;  %v1740_v41 = vcombine.low %v1574_v33, %v1720_v37  ;;  %v1741_v42 = vcombine.high %v1574_v33, %v1720_v37  ;;  %v2503_v43 = vpop.f32.mrb[7].mxu0  ;;  %v2508_v44 = vpop.f32.mrb[13].mxu1  ;;  %v1985_v37 = vld [vmem:[#allocation7 + $0x10] sm:$0xff] }
 0x4e2   : > { %v2068_v44 = vld [vmem:[%s3520_s6 + $0x18] sm:$0xff] }
 0x4e3   : > { %v1732_v45 = vrot.slane %v1724_v38, %v3221_v40  ;;  %v1739_v46 = vrot.slane %v1725_v39, %v3221_v40  ;;  %v1748_v48 = vrot.slane %v1740_v41, %v3221_v40  ;;  %v1755_v49 = vrot.slane %v1741_v42, %v3221_v40  ;;  %v1986_v38 = vld [vmem:[#allocation7 + $0x18] sm:$0xff]  ;;  %v2067_v42 = vld [vmem:[%s3520_s6 + $0x10] sm:$0xff] }
 0x4e4   : > { %v2578_v39 = vpack.c.bf16 %v1986_v38, %v1985_v37  ;;  %v2066_v41 = vld [vmem:[%s3520_s6 + $0x8] sm:$0xff] }
 0x4e5   : > { %v1756_v50 = vcombine.low %v1732_v45, %v1748_v48  ;;  %v1757_v51 = vcombine.high %v1732_v45, %v1748_v48  ;;  %v1772_v52 = vcombine.low %v1739_v46, %v1755_v49  ;;  %v1773_v53 = vcombine.high %v1739_v46, %v1755_v49  ;;  %v2069_v46 = vld [vmem:[%s3520_s6 + $0x20] sm:$0xff]  ;;  %v2070_v48 = vld [vmem:[%s3520_s6 + $0x28] sm:$0xff] }
 0x4e6   : > { %v2584_v45 = vpack.c.bf16 %v2068_v44, %v2067_v42  ;;  %v2587_v49 = vpack.c.bf16 %v2070_v48, %v2069_v46 }
 0x4e7   : > { %v1764_v56 = vrot.slane %v1756_v50, %v3223_v47  ;;  %v1771_v57 = vrot.slane %v1757_v51, %v3223_v47  ;;  %v1780_v58 = vrot.slane %v1772_v52, %v3223_v47  ;;  %v1787_v59 = vrot.slane %v1773_v53, %v3223_v47 }
 0x4e9   : > { %v1792_v61 = vcombine.low %v1764_v56, %v1771_v57  ;;  %v2368_v62 = vcombine.high %v1764_v56, %v1771_v57  ;;  %v1808_v63 = vcombine.low %v1780_v58, %v1787_v59  ;;  %v2369_v2 = vcombine.high %v1780_v58, %v1787_v59  ;;  %v2373_v56 = vld [vmem:[%s3521_s7 + $0x5] ss:$0 sm:$0xff]  ;;  %v2072_v59 = vld [vmem:[%s3520_s6 + $0x38] sm:$0xff] }
 0x4eb   : > { %v1799_v3 = vrot.slane %v1792_v61, %v3221_v40  ;;  %v1807_v4 = vrot.slane %v2368_v62, %v3221_v40  ;;  %v1815_v5 = vrot.slane %v1808_v63, %v3221_v40  ;;  %v1823_v6 = vrot.slane %v2369_v2, %v3221_v40  ;;  %v2374_v61 = vld [vmem:[%s3521_s7 + $0x6] ss:$0 sm:$0xff] }
 0x4ed   : > { %v1825_v7 = vcombine.high %v1799_v3, %v1807_v4  ;;  %v1841_v8 = vcombine.high %v1815_v5, %v1823_v6  ;;  %v1824_v9 = vcombine.low %v1799_v3, %v1807_v4  ;;  %v1840_v11 = vcombine.low %v1815_v5, %v1823_v6  ;;  %v2376_v4 = vld [vmem:[%s3521_s7 + $0x7] ss:$0 sm:$0xff] }
 0x4ef   : > { %v1839_v12 = vrot.slane %v1825_v7, %v3223_v47  ;;  %v1855_v13 = vrot.slane %v1841_v8, %v3223_v47  ;;  %v1832_v14 = vrot.slane %v1824_v9, %v3223_v47  ;;  %v1848_v15 = vrot.slane %v1840_v11, %v3223_v47 }
 0x4f1   : > { %v1858_v16 = vcombine.low %v1839_v12, %v1855_v13  ;;  %v1857_v17 = vcombine.high %v1832_v14, %v1848_v15  ;;  %v1859_v18 = vcombine.high %v1839_v12, %v1855_v13  ;;  %v1856_v19 = vcombine.low %v1832_v14, %v1848_v15 }
 0x4f3   : > { %1865 = vrot.lane.b32.xlu0 %v1858_v16, %s2902_s29  ;;  %1861 = vrot.lane.b32.xlu1 %v1857_v17, %s2903_s23 }
 0x4f7   : > { %1869 = vrot.lane.b32.xlu1 %v1859_v18, %s2904_s20  ;;  %s2207_s20 = sshll.u32 %s3280_s17, 4  ;;  %s2789_s17 = sshll.u32 %s2905_s16, 4  ;;  %s3422_s20 = int_to_ptr.vmem [resolvable:$true] %s2207_s20  ;;  %s2790_s17 = int_to_ptr.vmem [resolvable:$false] %s2789_s17 }
 0x4f8   : > { %s2785_s14 = scalar_lea.vmem %s3422_s20, 512  ;;  %s2791_s29 = scalar_lea.vmem %s2790_s17, 1024 }
 0x4f9   : > { %p2786_p11 = scmp.ne.s32.totalorder %s3422_s20, %s2785_s14  ;;  %p2792_p7 = scmp.lt.s32.totalorder %s3422_s20, %s2790_s17 }
 0x4fa   : > { %p2793_p9 = scmp.lt.s32.totalorder %s2791_s29, %s2785_s14 }
 0x4fb   : > { %p2787_p1 = pnand %p2786_p11, %p3543_p0 }
 0x4fc   : > { %p2794_p12 = por %p2793_p9, %p2792_p7 }
 0x4fd   : > { %p2788_p3 = pneg %p2787_p1 }
 0x4ff   : > { %p2795_p2 = pnand %p2794_p12, %p2788_p3 }
 0x565   : > { %v1862_v40 = vpop.permute.xlu1 %1861  ;;  %v1866_v20 = vpop.permute.xlu0 %1865 }
 0x566   : > { %v1872_v21 = vsel %vm1075_vm2, %v1856_v19, %v1862_v40 }
 0x567   : > { %v1874_v23 = vsel %vm1873_vm3, %v1872_v21, %v1866_v20 }
 0x569   : > { %v1870_v22 = vpop.permute.xlu1 %1869 }
 0x56a   : > { %v1876_v47 = vsel %vm1875_vm4, %v1874_v23, %v1870_v22 }
 0x56b   : > { %2518 = vmatmul.mubr.msk.f32.vlgmr.msra.gmra.mrb[8].mxu0 %vm407_vm1, %v1876_v47 }
 0x56c   : > { %2547 = vmatprep.mubr.msk.f32.mxu0 %vm2895_vm0, %v2896_v1  ;;  %v1983_v1 = vld [vmem:[#allocation7] sm:$0xff] }
 0x56d   : > { %v2575_v36 = vpack.c.bf16 %v1984_v35, %v1983_v1 }
 0x56f   : > { %2576 = vmatpush3.bf16.msra.mxu1 %v2575_v36 }
 0x570   : > { %2577 = vmatprep.subr.bf16.mxu1 %v2894_v0 }
 0x573   : > { %2579 = vmatpush3.bf16.msra.mxu1 %v2578_v39 }
 0x63e   : > { %v1954_v25 = vpop.f32.mrb[8].mxu0 }
 0x63f   : > { %v1955_v26 = vadd.f32 %v2370_v24, %v1954_v25  ;;  %v2519_v27 = vpop.f32.mrb[9].mxu0 }
 0x641   : > { %v1958_v28 = vadd.f32 %v1955_v26, %v3167_v10  ;;  %v2065_v10 = vld [vmem:[%s3520_s6] sm:$0xff] }
 0x642   : > { %v2581_v43 = vpack.c.bf16 %v2066_v41, %v2065_v10 }
 0x643   : > { %v1959_v29 = vsel %vm407_vm1, %v1958_v28, 0.0 }
 0x644   : > { %1960 = vadd.xlane.f32.xlu0 %v1959_v29  ;;  %2582 = vmatpush3.bf16.msra.mxu0 %v2581_v43 }
 0x645   : > { %2583 = vmatprep.subr.bf16.mxu0 %v2894_v0 }
 0x648   : > { %2585 = vmatpush3.bf16.msra.mxu0 %v2584_v45 }
 0x649   : > { %2586 = vmatprep.subr.bf16.mxu0 %v2894_v0 }
 0x64c   : > { %2588 = vmatpush3.bf16.msra.mxu0 %v2587_v49 }
 0x64d   : > { %2589 = vmatprep.subr.bf16.mxu0 %v2894_v0  ;;  %v2071_v0 = vld [vmem:[%s3520_s6 + $0x30] sm:$0xff] }
 0x64e   : > { %v2590_v60 = vpack.c.bf16 %v2072_v59, %v2071_v0 }
 0x650   : > { %2591 = vmatpush3.bf16.msra.mxu0 %v2590_v60 }
 0x6d1   : > { %v1961_v30 = vpop.xlane.xlu0 %1960 }
 0x6d2   : > { %v1963_v31 = vmul.f32 0.03125, %v1961_v30 }
 0x6d4   : > { %v1964_v32 = vsub.f32 %v1958_v28, %v1963_v31 }
 0x6d6   : > { %v1965_v33 = vmul.f32 %v1964_v32, %v1964_v32 }
 0x6d8   : > { %v1966_v34 = vsel %vm407_vm1, %v1965_v33, 0.0 }
 0x6d9   : > { %1967 = vadd.xlane.f32.xlu1 %v1966_v34 }
 0x766   : > { %v1968_v50 = vpop.xlane.xlu1 %1967 }
 0x767   : > { %v1969_v51 = vmul.f32 0.03125, %v1968_v50 }
 0x769   : > { %v1970_v52 = vadd.f32 1e-05, %v1969_v51 }
 0x76b   : > { %2695 = vrsqrt.f32 %v1970_v52 }
 0x775   : > { %v2696_v53 = vpop.eup %2695 }
 0x776   : > { %v1972_v55 = vmul.f32 %v2696_v53, %v1964_v32 }
 0x778   : > { %v1977_v57 = vmul.f32 %v2372_v54, %v1972_v55 }
 0x77a   : > { %v1982_v58 = vadd.f32 %v2373_v56, %v1977_v57 }
 0x77c   : > { %2529 = vmatmul.mubr.msk.f32.vlgmr.msra.gmra.mrb[14].mxu1 %vm407_vm1, %v1982_v58 }
 0x84f   : > { %v2060_v62 = vpop.f32.mrb[14].mxu1 }
 0x850   : > { %v2061_v63 = vadd.f32 %v2374_v61, %v2060_v62  ;;  %v2530_v2 = vpop.f32.mrb[15].mxu1 }
 0x852   : > { %v2064_v3 = vmax.f32 %v2061_v63, 0.0 }
 0x854   : > { %2548 = vmatmul.mubr.msk.f32.vlgmr.msra.gmra.mrb[10].mxu0 %vm2077_vm5, %v2064_v3 }
 0x927   : > { %v2147_v5 = vpop.f32.mrb[10].mxu0 }
 0x928   : > { %v2148_v6 = vadd.f32 %v2376_v4, %v2147_v5  ;;  %v2549_v7 = vpop.f32.mrb[11].mxu0 }
 0x92a   : > { %v2151_v8 = vadd.f32 %v2148_v6, %v1982_v58 }
 0x92c   : > { %v2152_v9 = vsel %vm407_vm1, %v2151_v8, 0.0 }
 0x92d   : > { %2153 = vadd.xlane.f32.xlu0 %v2152_v9 }
 0x9ba   : > { %v2154_v11 = vpop.xlane.xlu0 %2153 }
 0x9bb   : > { %v2155_v12 = vmul.f32 0.03125, %v2154_v11 }
 0x9bd   : > { %v2156_v13 = vsub.f32 %v2151_v8, %v2155_v12 }
 0x9bf   : > { %v2157_v14 = vmul.f32 %v2156_v13, %v2156_v13 }
 0x9c1   : > { %v2158_v15 = vsel %vm407_vm1, %v2157_v14, 0.0 }
 0x9c2   : > { %2159 = vadd.xlane.f32.xlu0 %v2158_v15 }
 0x9c3   : > { %2798 = shalt.err (!%p2795_p2)
}
 0x9c4   : > { %s2799_s22 = scalar_lea.hbm %s3429_s19, 512  ;;  %s2803_s16 = scalar_lea.hbm %s3523_s9, 1024 }
 0x9c5   : > { %p2800_p13 = scmp.ne.s32.totalorder %s3429_s19, %s2799_s22  ;;  %p2804_p4 = scmp.lt.u32.totalorder %s3429_s19, %s3523_s9 }
 0x9c6   : > { %p2805_p5 = scmp.lt.u32.totalorder %s2803_s16, %s2799_s22  ;;  %p2807_p11 = scmp.lt.u32.totalorder %s2799_s22, %s3429_s19 }
 0x9c7   : > { %p2801_p6 = pnand %p2800_p13, %p3543_p0 }
 0x9c8   : > { %p2806_p8 = por %p2805_p5, %p2804_p4 }
 0x9c9   : > { %p2802_p10 = pneg %p2801_p6 }
 0x9ca   : > { %p2808_p1 = por %p2807_p11, %p2806_p8 }
 0x9cc   : > { %p2809_p3 = pnand %p2808_p1, %p2802_p10 }
 0x9ce   : > { %2812 = shalt.err (!%p2809_p3)
}
 0x9cf   : > { %s2906_s14 = smov 128   ;;  %s2907_s29 = smov 256   ;;  %v2378_v40 = vld [vmem:[%s3521_s7 + $0x8] ss:$0 sm:$0xff]  ;;  %v2379_v21 = vld [vmem:[%s3521_s7 + $0x9] ss:$0 sm:$0xff] }
 0x9d0   : > { %2603 = dma.vmem_to_hbm [thread:$0]  (%p3543_p0), %s3422_s20, 512, %s3429_s19, %s2182_s15, %s2906_s14, %s2907_s29, %s2903_s23  }
 0x9d1   : > { %s3544_s16 = sshll.u32 %s3128_s25, 3  ;;  %s3545_s23 = sshll.u32 %s2980_s13, 7 }
 0x9d2   : > { %s380_s17 = scalar_lea.vmem [#allocation8], %s3544_s16  ;;  %s3469_s15 = scalar_lea.hbm %s3522_s8, %s3545_s23 }
 0x9d3   : > { %s2195_s0 = sshll.u32 %s380_s17, 4  ;;  %s2177_s14 = scalar_lea.sflag [#allocation4], %s3128_s25  ;;  %s3471_s0 = int_to_ptr.vmem [resolvable:$true] %s2195_s0 }
 0x9d4   : > { %s2813_s29 = scalar_lea.vmem %s3471_s0, 128  ;;  %s2908_s18 = smov [#allocation8]  }
 0x9d5   : > { %p2814_p7 = scmp.ne.s32.totalorder %s3471_s0, %s2813_s29  ;;  %s2817_s13 = sshll.u32 %s2908_s18, 4  ;;  %s2818_s13 = int_to_ptr.vmem [resolvable:$false] %s2817_s13 }
 0x9d6   : > { %s2819_s28 = scalar_lea.vmem %s2818_s13, 256  ;;  %p2820_p2 = scmp.lt.s32.totalorder %s3471_s0, %s2818_s13 }
 0x9d7   : > { %p2815_p9 = pnand %p2814_p7, %p3543_p0  ;;  %p2821_p13 = scmp.lt.s32.totalorder %s2819_s28, %s2813_s29 }
 0x9d9   : > { %p2816_p12 = pneg %p2815_p9  ;;  %p2822_p6 = por %p2821_p13, %p2820_p2 }
 0x9db   : > { %p2823_p10 = pnand %p2822_p6, %p2816_p12 }
 0xa4f   : > { %v2160_v16 = vpop.xlane.xlu0 %2159 }
 0xa50   : > { %v2161_v17 = vmul.f32 0.03125, %v2160_v16 }
 0xa52   : > { %v2162_v18 = vadd.f32 1e-05, %v2161_v17 }
 0xa54   : > { %2697 = vrsqrt.f32 %v2162_v18 }
 0xa5e   : > { %v2698_v19 = vpop.eup %2697 }
 0xa5f   : > { %v2164_v20 = vmul.f32 %v2698_v19, %v2156_v13 }
 0xa61   : > { %v2169_v22 = vmul.f32 %v2378_v40, %v2164_v20 }
 0xa63   : > { %v2174_v23 = vadd.f32 %v2379_v21, %v2169_v22 }
 0xa65   : > { %2175 = vst.msk [vmem:[%s380_s17] sm:$0xff] %vm407_vm1, %v2174_v23 }
 0xa66   : > { %2826 = shalt.err (!%p2823_p10)
}
 0xa67   : > { %s2827_s25 = scalar_lea.hbm %s3469_s15, 128  ;;  %s2831_s16 = scalar_lea.hbm %s3522_s8, 256 }
 0xa68   : > { %p2828_p4 = scmp.ne.s32.totalorder %s3469_s15, %s2827_s25  ;;  %p2832_p11 = scmp.lt.u32.totalorder %s3469_s15, %s3522_s8 }
 0xa69   : > { %p2833_p1 = scmp.lt.u32.totalorder %s2831_s16, %s2827_s25  ;;  %p2835_p7 = scmp.lt.u32.totalorder %s2827_s25, %s3469_s15 }
 0xa6a   : > { %p2829_p5 = pnand %p2828_p4, %p3543_p0 }
 0xa6b   : > { %p2834_p3 = por %p2833_p1, %p2832_p11 }
 0xa6c   : > { %p2830_p8 = pneg %p2829_p5 }
 0xa6d   : > { %p2836_p9 = por %p2835_p7, %p2834_p3 }
 0xa6f   : > { %p2837_p12 = pnand %p2836_p9, %p2830_p8 }
 0xa71   : > { %2840 = shalt.err (!%p2837_p12)
}
 0xa72   : > { %2602 = dma.vmem_to_hbm [thread:$0]  (%p3543_p0), %s3471_s0, 128, %s3469_s15, %s2177_s14  }
 0xa73 PF: > { %s3546_s20 = sld [smem:[#allocation15_spill]]  ;;  %s2222_s19 = sand.u32 1, %s2875_s30  }
 0xa74   : > { %p3548_p13 = scmp.ge.s32.totalorder %s2887_s12, 2  ;;  %s2223_s29 = scalar_lea.sflag [#allocation4], %s2222_s19 }
 0xa79   : > { %p3547_p2 = scmp.ne.s32.totalorder %s3546_s20, 0 }
 0xa7b   : > { %p2618_p6 = pnand %p3548_p13, %p3547_p2 }
 0xa7d   : > { %2866 = dma.done.wait (!%p2618_p6), %s2223_s29, 128  }
 0xa7e   : > { %2868 = vsyncadd (!%p2618_p6), %s2223_s29, 4294967168  ;;  %s2232_s18 = scalar_lea.sflag [#allocation10], %s2222_s19 }
 0xa7f   : > { %2870 = dma.done.wait (!%p2618_p6), %s2232_s18, 512  }
 0xa80   : > { %2872 = vsyncadd (!%p2618_p6), %s2232_s18, 4294966784  ;;  %p27_p0 = scmp.ge.s32.totalorder %s3069_s24, 4   ;;  %s3549_s30 = smov %s2879_s10 }
 0xa81   : > { %s3550_s10 = smov %s2883_s11  ;;  %s3551_s11 = smov %s3085_s27 }
 0xa82   : > { %s3552_s12 = smov %s3069_s24  ;;  %29 = sbr.rel (!%p27_p0) target bundleno = 10 (0xa), region = 122 }
 0xa89   :  { %2237 = vsyncpa [#allocation3], 1 }
 0xa8a   :  { %2239 = vsyncpa [#allocation3 + $0x1], 1 }
 0xa8b   :  { %2240 = vsyncpa [#allocation6], 1 }
 0xa8c   :  { %2241 = vsyncpa [#allocation4], 1 }
 0xa8d   :  { %2243 = vsyncpa [#allocation4 + $0x1], 1 }
 0xa8e   :  { %2244 = vsyncpa [#allocation10], 1 }
 0xa8f   :  { %2246 = vsyncpa [#allocation10 + $0x1], 1 }

</bundles_post_ra>
